<compile_context>
chip_gen: v5e
topology: v5e:2x2
jax: 0.10.0
libtpu: 0.0.40
codegen_flags: <defaults>
</compile_context>

<pallas_src>
import functools

import jax
import jax.numpy as jnp
import numpy as np
from jax import lax
from jax.experimental import pallas as pl
from jax.experimental.pallas import tpu as pltpu


def _adaptive_conv_kernel(x_ref, w_ref, mask_ref, f1w_ref, f1b_ref, f2w_ref, bc_ref,
                          out_ref, taps_ref, *, H, W, Bblk, ni):
    """One grid step processes Bblk whole images.

    x_ref:    (Bblk, ni, HW)   images, channels on sublanes, pixels on lanes
    w_ref:    (no, 9*ni)       fused conv1(3x3) + conv2(1x1, centre tap) weights, lane-dense
    mask_ref: (8*ni, HW)       {0,1} edge masks for the 8 non-centre taps (pre-broadcast over ni)
    f1w_ref:  (no, ni)         SE fc1 weight (transposed)
    f1b_ref:  (no, 1)          SE fc1 bias
    f2w_ref:  (no, no)         SE fc2 weight (transposed)
    bc_ref:   (no, 1)          constant bias  b1 + b2 + f2b
    out_ref:  (Bblk, no, HW)
    taps_ref: (9*ni, Bblk*HW)  VMEM im2col scratch
    """
    HW = H * W
    gaps = []

    # ---- build the (9*ni, Bblk*HW) im2col operand: rolls on XLU, one vmul per tap ----
    for b in range(Bblk):
        x_b = x_ref[b]                                            # (ni, HW)
        lo = b * HW
        gaps.append(jnp.mean(x_b, axis=1, keepdims=True))         # (ni, 1) for SE branch
        taps_ref[4 * ni:5 * ni, lo:lo + HW] = x_b                 # centre tap: no shift/mask
        m = 0
        for dy in (-1, 0, 1):
            for dx in (-1, 0, 1):
                if dy == 0 and dx == 0:
                    continue
                k = (dy + 1) * 3 + (dx + 1)
                off = dy * W + dx
                shifted = pltpu.roll(x_b, (-off) % HW, axis=1)    # shifted[p] = x[p + off]
                taps_ref[k * ni:(k + 1) * ni, lo:lo + HW] = (
                    shifted * mask_ref[m * ni:(m + 1) * ni, :])   # SAME zero padding
                m += 1

    # ---- ONE MXU matmul for all 9 taps of all Bblk images ----
    acc = jnp.dot(w_ref[...], taps_ref[...], preferred_element_type=jnp.float32)  # (no, Bblk*HW)

    # ---- fused SE branch per image: gap -> fc1 -> relu -> fc2 (+ folded constant bias) ----
    for b in range(Bblk):
        lo = b * HW
        hid = jnp.maximum(
            jnp.dot(f1w_ref[...], gaps[b], preferred_element_type=jnp.float32)
            + f1b_ref[...], 0.0)                                              # (no, 1)
        se = jnp.dot(f2w_ref[...], hid, preferred_element_type=jnp.float32) + bc_ref[...]
        out_ref[b] = (acc[:, lo:lo + HW] + se).astype(out_ref.dtype)


def adaptive_conv2d(x, w1_hwio, b1, w2_io, b2, f1w, f1b, f2w, f2b, w_param):
    B, ni, H, W = x.shape
    no = w1_hwio.shape[-1]
    HW = H * W

    # F.softmax(w, dim=1) over a size-1 dim is identically 1.0 -> alpha = beta = gamma = 1,
    # so out = conv1(x) + conv2(x) + SE and `w_param` drops out exactly.
    del w_param

    # Fold the 1x1 conv2 into the centre tap; lay out as ONE lane-dense (no, 9*ni) matrix.
    w_taps = w1_hwio.astype(jnp.float32).at[1, 1].add(w2_io.astype(jnp.float32))  # (3,3,ni,no)
    w_all = jnp.transpose(w_taps.reshape(9, ni, no), (2, 0, 1)).reshape(no, 9 * ni)

    # SE-branch params, pre-transposed; all constant biases folded into one vector.
    f1wT = jnp.transpose(f1w).astype(jnp.float32)                 # (no, ni)
    f2wT = jnp.transpose(f2w).astype(jnp.float32)                 # (no, no)
    f1b_c = f1b.reshape(no, 1).astype(jnp.float32)
    bconst = (b1 + b2 + f2b).reshape(no, 1).astype(jnp.float32)

    # Static {0,1} edge masks for the 8 non-centre taps, pre-broadcast over channels.
    # Built with numpy -> a baked constant: no runtime HLO, no in-kernel broadcast_in_dim.
    ys, xs = np.meshgrid(np.arange(H), np.arange(W), indexing="ij")
    rows = []
    for dy in (-1, 0, 1):
        for dx in (-1, 0, 1):
            if dy == 0 and dx == 0:
                continue
            rows.append(((ys + dy >= 0) & (ys + dy < H) &
                         (xs + dx >= 0) & (xs + dx < W)).reshape(HW))
    masks = jnp.asarray(np.repeat(np.stack(rows).astype(np.float32), ni, axis=0))  # (8*ni, HW)

    # Batch blocking: Bblk images per step amortizes step overhead and widens the MXU RHS
    # to Bblk*HW lanes; keep >= 2 grid steps (when B >= 2) so both v7x TensorCores get work.
    TARGET_LANES = 4096
    max_blk = max(1, min(B, TARGET_LANES // HW))
    if B >= 2:
        max_blk = max(1, min(max_blk, B // 2))
    Bblk = max(d for d in range(1, max_blk + 1) if B % d == 0)
    grid = (B // Bblk,)

    x_flat = x.reshape(B, ni, HW)      # NCHW is channels-major per image: free reshape

    kernel = functools.partial(_adaptive_conv_kernel, H=H, W=W, Bblk=Bblk, ni=ni)

    out = pl.pallas_call(
        kernel,
        out_shape=jax.ShapeDtypeStruct((B, no, HW), x.dtype),
        grid=grid,
        in_specs=[
            pl.BlockSpec((Bblk, ni, HW), lambda g: (g, 0, 0)),     # Bblk images per step
            pl.BlockSpec((no, 9 * ni), lambda g: (0, 0)),          # fused conv weights (shared)
            pl.BlockSpec((8 * ni, HW), lambda g: (0, 0)),          # constant edge masks
            pl.BlockSpec((no, ni), lambda g: (0, 0)),              # SE fc1 weight^T
            pl.BlockSpec((no, 1), lambda g: (0, 0)),               # SE fc1 bias
            pl.BlockSpec((no, no), lambda g: (0, 0)),              # SE fc2 weight^T
            pl.BlockSpec((no, 1), lambda g: (0, 0)),               # folded constant bias
        ],
        out_specs=pl.BlockSpec((Bblk, no, HW), lambda g: (g, 0, 0)),
        scratch_shapes=[pltpu.VMEM((9 * ni, Bblk * HW), jnp.float32)],   # im2col scratch
        compiler_params=pltpu.CompilerParams(dimension_semantics=("parallel",)),
    )(x_flat, w_all, masks, f1wT, f1b_c, f2wT, bconst)

    return out.reshape(B, no, H, W)


def ref_forward(x, w1_hwio, b1, w2_io, b2, f1w, f1b, f2w, f2b, w_param):
    """Pure-JAX reference of AdaptiveConv2D.forward (non-lite, non-pixel_aware)."""
    B, ni, H, W = x.shape
    no = w1_hwio.shape[-1]
    dn = ('NCHW', 'HWIO', 'NCHW')
    x1 = lax.conv_general_dilated(x, w1_hwio, (1, 1), 'SAME',
                                  dimension_numbers=dn) + b1.reshape(1, no, 1, 1)
    x2 = lax.conv_general_dilated(x, w2_io.reshape(1, 1, ni, no), (1, 1), 'SAME',
                                  dimension_numbers=dn) + b2.reshape(1, no, 1, 1)
    gap = jnp.mean(x, axis=(2, 3), keepdims=True)                      # AdaptiveAvgPool2d(1)
    h = jnp.maximum(jnp.einsum('bihw,io->bohw', gap, f1w) + f1b.reshape(1, no, 1, 1), 0.0)
    fc = jnp.einsum('bihw,io->bohw', h, f2w) + f2b.reshape(1, no, 1, 1)
    fc = jnp.broadcast_to(fc, x1.shape)                                # nearest interpolate
    p = jax.nn.softmax(w_param, axis=1)
    alpha, beta, gamma = p[0:1], p[1:2], p[2:3]
    return alpha * x1 + beta * x2 + gamma * fc


if __name__ == "__main__":
    B, ni, no, H, W = 2, 4, 8, 16, 16   # size=(16,16), kernel_size=3, stride=1, dilation=1

    key = jax.random.PRNGKey(0)
    ks = jax.random.split(key, 10)
    x = jax.random.normal(ks[0], (B, ni, H, W), jnp.float32)

    # deterministic parameter init (shapes from the module's __init__)
    w1 = 0.1 * jax.random.normal(ks[1], (3, 3, ni, no), jnp.float32)   # conv1 (HWIO)
    b1 = 0.1 * jax.random.normal(ks[2], (no,), jnp.float32)
    w2 = 0.1 * jax.random.normal(ks[3], (ni, no), jnp.float32)         # conv2 1x1 (IO)
    b2 = 0.1 * jax.random.normal(ks[4], (no,), jnp.float32)
    f1w = 0.1 * jax.random.normal(ks[5], (ni, no), jnp.float32)        # fc1 1x1 (IO)
    f1b = 0.1 * jax.random.normal(ks[6], (no,), jnp.float32)
    f2w = 0.1 * jax.random.normal(ks[7], (no, no), jnp.float32)        # fc2 1x1 (IO)
    f2b = 0.1 * jax.random.normal(ks[8], (no,), jnp.float32)
    w_param = jnp.ones((3, 1, H, W), jnp.float32)                      # nn.Parameter(torch.ones(3,1,H,W))

    out = adaptive_conv2d(x, w1, b1, w2, b2, f1w, f1b, f2w, f2b, w_param)
    out = jax.block_until_ready(out)

    ref = ref_forward(x, w1, b1, w2, b2, f1w, f1b, f2w, f2b, w_param)
    assert out.shape == (B, no, H, W), out.shape
    assert jnp.allclose(out, ref, atol=1e-4, rtol=1e-4), float(jnp.max(jnp.abs(out - ref)))

    print("KERNEL_OK")
</pallas_src>

<mosaic_0001>
module attributes {stable_mosaic.version = 11 : i64} {
  func.func @_adaptive_conv_kernel(%arg0: i32, %arg1: memref<1x4x256xf32, #tpu.memory_space<vmem>>, %arg2: memref<8x36xf32, #tpu.memory_space<vmem>>, %arg3: memref<32x256xf32, #tpu.memory_space<vmem>>, %arg4: memref<8x4xf32, #tpu.memory_space<vmem>>, %arg5: memref<8x1xf32, #tpu.memory_space<vmem>>, %arg6: memref<8x8xf32, #tpu.memory_space<vmem>>, %arg7: memref<8x1xf32, #tpu.memory_space<vmem>>, %arg8: memref<1x8x256xf32, #tpu.memory_space<vmem>>, %arg9: memref<36x256xf32, #tpu.memory_space<vmem>>) attributes {dimension_semantics = [#tpu.dimension_semantics<parallel>], iteration_bounds = array<i64: 2>, scalar_prefetch = 0 : i64, scratch_operands = 1 : i64, tpu.core_type = #tpu.core_type<tc>, window_params = [{transform_indices = @transform_0, window_bounds = array<i64: 1, 4, 256>}, {pipeline_mode = #tpu.pipeline_mode<synchronous>, transform_indices = @transform_1, window_bounds = array<i64: 8, 36>}, {pipeline_mode = #tpu.pipeline_mode<synchronous>, transform_indices = @transform_2, window_bounds = array<i64: 32, 256>}, {pipeline_mode = #tpu.pipeline_mode<synchronous>, transform_indices = @transform_3, window_bounds = array<i64: 8, 4>}, {pipeline_mode = #tpu.pipeline_mode<synchronous>, transform_indices = @transform_4, window_bounds = array<i64: 8, 1>}, {pipeline_mode = #tpu.pipeline_mode<synchronous>, transform_indices = @transform_5, window_bounds = array<i64: 8, 8>}, {pipeline_mode = #tpu.pipeline_mode<synchronous>, transform_indices = @transform_6, window_bounds = array<i64: 8, 1>}, {transform_indices = @transform_7, window_bounds = array<i64: 1, 8, 256>}]} {
    %c0 = arith.constant 0 : index
    %c0_0 = arith.constant 0 : index
    %c0_1 = arith.constant 0 : index
    %0 = vector.load %arg1[%c0, %c0_0, %c0_1] : memref<1x4x256xf32, #tpu.memory_space<vmem>>, vector<1x4x256xf32>
    %1 = vector.shape_cast %0 : vector<1x4x256xf32> to vector<4x256xf32>
    %cst = arith.constant dense<0.000000e+00> : vector<4xf32>
    %2 = vector.multi_reduction <add>, %1, %cst [1] : vector<4x256xf32> to vector<4xf32>
    %3 = vector.shape_cast %2 : vector<4xf32> to vector<4x1xf32>
    %cst_2 = arith.constant 2.560000e+02 : f32
    %4 = vector.broadcast %cst_2 : f32 to vector<4x1xf32>
    %5 = arith.divf %3, %4 : vector<4x1xf32>
    %c16 = arith.constant 16 : index
    %c0_3 = arith.constant 0 : index
    %6 = vector.load %arg9[%c16, %c0_3] : memref<36x256xf32, #tpu.memory_space<vmem>>, vector<4x256xf32>
    tpu.vector_store %arg9[%c16, %c0_3], %1 {strides = array<i32>} : memref<36x256xf32, #tpu.memory_space<vmem>>, vector<4x256xf32>,
    %c17_i32 = arith.constant 17 : i32
    %7 = tpu.dynamic_rotate %1 by %c17_i32 dim 1 : vector<4x256xf32>, i32 -> vector<4x256xf32>
    %c0_4 = arith.constant 0 : index
    %c0_5 = arith.constant 0 : index
    %8 = vector.load %arg3[%c0_4, %c0_5] : memref<32x256xf32, #tpu.memory_space<vmem>>, vector<4x256xf32>
    %9 = arith.mulf %7, %8 : vector<4x256xf32>
    %c0_6 = arith.constant 0 : index
    %c0_7 = arith.constant 0 : index
    %10 = vector.load %arg9[%c0_6, %c0_7] : memref<36x256xf32, #tpu.memory_space<vmem>>, vector<4x256xf32>
    tpu.vector_store %arg9[%c0_6, %c0_7], %9 {strides = array<i32>} : memref<36x256xf32, #tpu.memory_space<vmem>>, vector<4x256xf32>,
    %c16_i32 = arith.constant 16 : i32
    %11 = tpu.dynamic_rotate %1 by %c16_i32 dim 1 : vector<4x256xf32>, i32 -> vector<4x256xf32>
    %c4 = arith.constant 4 : index
    %c0_8 = arith.constant 0 : index
    %12 = vector.load %arg3[%c4, %c0_8] : memref<32x256xf32, #tpu.memory_space<vmem>>, vector<4x256xf32>
    %13 = arith.mulf %11, %12 : vector<4x256xf32>
    %c4_9 = arith.constant 4 : index
    %c0_10 = arith.constant 0 : index
    %14 = vector.load %arg9[%c4_9, %c0_10] : memref<36x256xf32, #tpu.memory_space<vmem>>, vector<4x256xf32>
    tpu.vector_store %arg9[%c4_9, %c0_10], %13 {strides = array<i32>} : memref<36x256xf32, #tpu.memory_space<vmem>>, vector<4x256xf32>,
    %c15_i32 = arith.constant 15 : i32
    %15 = tpu.dynamic_rotate %1 by %c15_i32 dim 1 : vector<4x256xf32>, i32 -> vector<4x256xf32>
    %c8 = arith.constant 8 : index
    %c0_11 = arith.constant 0 : index
    %16 = vector.load %arg3[%c8, %c0_11] : memref<32x256xf32, #tpu.memory_space<vmem>>, vector<4x256xf32>
    %17 = arith.mulf %15, %16 : vector<4x256xf32>
    %c8_12 = arith.constant 8 : index
    %c0_13 = arith.constant 0 : index
    %18 = vector.load %arg9[%c8_12, %c0_13] : memref<36x256xf32, #tpu.memory_space<vmem>>, vector<4x256xf32>
    tpu.vector_store %arg9[%c8_12, %c0_13], %17 {strides = array<i32>} : memref<36x256xf32, #tpu.memory_space<vmem>>, vector<4x256xf32>,
    %c1_i32 = arith.constant 1 : i32
    %19 = tpu.dynamic_rotate %1 by %c1_i32 dim 1 : vector<4x256xf32>, i32 -> vector<4x256xf32>
    %c12 = arith.constant 12 : index
    %c0_14 = arith.constant 0 : index
    %20 = vector.load %arg3[%c12, %c0_14] : memref<32x256xf32, #tpu.memory_space<vmem>>, vector<4x256xf32>
    %21 = arith.mulf %19, %20 : vector<4x256xf32>
    %c12_15 = arith.constant 12 : index
    %c0_16 = arith.constant 0 : index
    %22 = vector.load %arg9[%c12_15, %c0_16] : memref<36x256xf32, #tpu.memory_space<vmem>>, vector<4x256xf32>
    tpu.vector_store %arg9[%c12_15, %c0_16], %21 {strides = array<i32>} : memref<36x256xf32, #tpu.memory_space<vmem>>, vector<4x256xf32>,
    %c255_i32 = arith.constant 255 : i32
    %23 = tpu.dynamic_rotate %1 by %c255_i32 dim 1 : vector<4x256xf32>, i32 -> vector<4x256xf32>
    %c16_17 = arith.constant 16 : index
    %c0_18 = arith.constant 0 : index
    %24 = vector.load %arg3[%c16_17, %c0_18] : memref<32x256xf32, #tpu.memory_space<vmem>>, vector<4x256xf32>
    %25 = arith.mulf %23, %24 : vector<4x256xf32>
    %c20 = arith.constant 20 : index
    %c0_19 = arith.constant 0 : index
    %26 = vector.load %arg9[%c20, %c0_19] : memref<36x256xf32, #tpu.memory_space<vmem>>, vector<4x256xf32>
    tpu.vector_store %arg9[%c20, %c0_19], %25 {strides = array<i32>} : memref<36x256xf32, #tpu.memory_space<vmem>>, vector<4x256xf32>,
    %c241_i32 = arith.constant 241 : i32
    %27 = tpu.dynamic_rotate %1 by %c241_i32 dim 1 : vector<4x256xf32>, i32 -> vector<4x256xf32>
    %c20_20 = arith.constant 20 : index
    %c0_21 = arith.constant 0 : index
    %28 = vector.load %arg3[%c20_20, %c0_21] : memref<32x256xf32, #tpu.memory_space<vmem>>, vector<4x256xf32>
    %29 = arith.mulf %27, %28 : vector<4x256xf32>
    %c24 = arith.constant 24 : index
    %c0_22 = arith.constant 0 : index
    %30 = vector.load %arg9[%c24, %c0_22] : memref<36x256xf32, #tpu.memory_space<vmem>>, vector<4x256xf32>
    tpu.vector_store %arg9[%c24, %c0_22], %29 {strides = array<i32>} : memref<36x256xf32, #tpu.memory_space<vmem>>, vector<4x256xf32>,
    %c240_i32 = arith.constant 240 : i32
    %31 = tpu.dynamic_rotate %1 by %c240_i32 dim 1 : vector<4x256xf32>, i32 -> vector<4x256xf32>
    %c24_23 = arith.constant 24 : index
    %c0_24 = arith.constant 0 : index
    %32 = vector.load %arg3[%c24_23, %c0_24] : memref<32x256xf32, #tpu.memory_space<vmem>>, vector<4x256xf32>
    %33 = arith.mulf %31, %32 : vector<4x256xf32>
    %c28 = arith.constant 28 : index
    %c0_25 = arith.constant 0 : index
    %34 = vector.load %arg9[%c28, %c0_25] : memref<36x256xf32, #tpu.memory_space<vmem>>, vector<4x256xf32>
    tpu.vector_store %arg9[%c28, %c0_25], %33 {strides = array<i32>} : memref<36x256xf32, #tpu.memory_space<vmem>>, vector<4x256xf32>,
    %c239_i32 = arith.constant 239 : i32
    %35 = tpu.dynamic_rotate %1 by %c239_i32 dim 1 : vector<4x256xf32>, i32 -> vector<4x256xf32>
    %c28_26 = arith.constant 28 : index
    %c0_27 = arith.constant 0 : index
    %36 = vector.load %arg3[%c28_26, %c0_27] : memref<32x256xf32, #tpu.memory_space<vmem>>, vector<4x256xf32>
    %37 = arith.mulf %35, %36 : vector<4x256xf32>
    %c32 = arith.constant 32 : index
    %c0_28 = arith.constant 0 : index
    %38 = vector.load %arg9[%c32, %c0_28] : memref<36x256xf32, #tpu.memory_space<vmem>>, vector<4x256xf32>
    tpu.vector_store %arg9[%c32, %c0_28], %37 {strides = array<i32>} : memref<36x256xf32, #tpu.memory_space<vmem>>, vector<4x256xf32>,
    %c0_29 = arith.constant 0 : index
    %c0_30 = arith.constant 0 : index
    %39 = vector.load %arg2[%c0_29, %c0_30] : memref<8x36xf32, #tpu.memory_space<vmem>>, vector<8x36xf32>
    %c0_31 = arith.constant 0 : index
    %c0_32 = arith.constant 0 : index
    %40 = vector.load %arg9[%c0_31, %c0_32] : memref<36x256xf32, #tpu.memory_space<vmem>>, vector<36x256xf32>
    %cst_33 = arith.constant dense<0.000000e+00> : vector<8x256xf32>
    %41 = tpu.matmul %39, %40, %cst_33 {dimension_numbers = #tpu.dot_dimension_numbers<[1], [0], [0], [1], [0, 0, 1, 1], [], []>} : vector<8x36xf32>, vector<36x256xf32>, vector<8x256xf32> -> vector<8x256xf32>
    %c0_34 = arith.constant 0 : index
    %c0_35 = arith.constant 0 : index
    %42 = vector.load %arg4[%c0_34, %c0_35] : memref<8x4xf32, #tpu.memory_space<vmem>>, vector<8x4xf32>
    %cst_36 = arith.constant dense<0.000000e+00> : vector<8x1xf32>
    %43 = tpu.matmul %42, %5, %cst_36 {dimension_numbers = #tpu.dot_dimension_numbers<[1], [0], [0], [1], [0, 0, 1, 1], [], []>} : vector<8x4xf32>, vector<4x1xf32>, vector<8x1xf32> -> vector<8x1xf32>
    %c0_37 = arith.constant 0 : index
    %c0_38 = arith.constant 0 : index
    %44 = vector.load %arg5[%c0_37, %c0_38] : memref<8x1xf32, #tpu.memory_space<vmem>>, vector<8x1xf32>
    %45 = arith.addf %43, %44 : vector<8x1xf32>
    %cst_39 = arith.constant 0.000000e+00 : f32
    %46 = vector.broadcast %cst_39 : f32 to vector<8x1xf32>
    %47 = arith.maximumf %45, %46 : vector<8x1xf32>
    %c0_40 = arith.constant 0 : index
    %c0_41 = arith.constant 0 : index
    %48 = vector.load %arg6[%c0_40, %c0_41] : memref<8x8xf32, #tpu.memory_space<vmem>>, vector<8x8xf32>
    %cst_42 = arith.constant dense<0.000000e+00> : vector<8x1xf32>
    %49 = tpu.matmul %48, %47, %cst_42 {dimension_numbers = #tpu.dot_dimension_numbers<[1], [0], [0], [1], [0, 0, 1, 1], [], []>} : vector<8x8xf32>, vector<8x1xf32>, vector<8x1xf32> -> vector<8x1xf32>
    %c0_43 = arith.constant 0 : index
    %c0_44 = arith.constant 0 : index
    %50 = vector.load %arg7[%c0_43, %c0_44] : memref<8x1xf32, #tpu.memory_space<vmem>>, vector<8x1xf32>
    %51 = arith.addf %49, %50 : vector<8x1xf32>
    %52 = vector.broadcast %51 : vector<8x1xf32> to vector<8x256xf32>
    %53 = arith.addf %41, %52 : vector<8x256xf32>
    %c0_45 = arith.constant 0 : index
    %c0_46 = arith.constant 0 : index
    %c0_47 = arith.constant 0 : index
    %54 = vector.load %arg8[%c0_45, %c0_46, %c0_47] : memref<1x8x256xf32, #tpu.memory_space<vmem>>, vector<1x8x256xf32>
    %55 = vector.shape_cast %54 : vector<1x8x256xf32> to vector<8x256xf32>
    %56 = vector.shape_cast %53 : vector<8x256xf32> to vector<1x8x256xf32>
    tpu.vector_store %arg8[%c0_45, %c0_46, %c0_47], %56 {strides = array<i32>} : memref<1x8x256xf32, #tpu.memory_space<vmem>>, vector<1x8x256xf32>,
    return
  }
  func.func @transform_0(%arg0: i32) -> (i32, i32, i32) {
    %c0_i32 = arith.constant 0 : i32
    %c0_i32_0 = arith.constant 0 : i32
    %c0_i32_1 = arith.constant 0 : i32
    return %arg0, %c0_i32, %c0_i32_0 : i32, i32, i32
  }
  func.func @transform_1(%arg0: i32) -> (i32, i32) {
    %c0_i32 = arith.constant 0 : i32
    %c0_i32_0 = arith.constant 0 : i32
    %c0_i32_1 = arith.constant 0 : i32
    return %c0_i32, %c0_i32_0 : i32, i32
  }
  func.func @transform_2(%arg0: i32) -> (i32, i32) {
    %c0_i32 = arith.constant 0 : i32
    %c0_i32_0 = arith.constant 0 : i32
    %c0_i32_1 = arith.constant 0 : i32
    return %c0_i32, %c0_i32_0 : i32, i32
  }
  func.func @transform_3(%arg0: i32) -> (i32, i32) {
    %c0_i32 = arith.constant 0 : i32
    %c0_i32_0 = arith.constant 0 : i32
    %c0_i32_1 = arith.constant 0 : i32
    return %c0_i32, %c0_i32_0 : i32, i32
  }
  func.func @transform_4(%arg0: i32) -> (i32, i32) {
    %c0_i32 = arith.constant 0 : i32
    %c0_i32_0 = arith.constant 0 : i32
    %c0_i32_1 = arith.constant 0 : i32
    return %c0_i32, %c0_i32_0 : i32, i32
  }
  func.func @transform_5(%arg0: i32) -> (i32, i32) {
    %c0_i32 = arith.constant 0 : i32
    %c0_i32_0 = arith.constant 0 : i32
    %c0_i32_1 = arith.constant 0 : i32
    return %c0_i32, %c0_i32_0 : i32, i32
  }
  func.func @transform_6(%arg0: i32) -> (i32, i32) {
    %c0_i32 = arith.constant 0 : i32
    %c0_i32_0 = arith.constant 0 : i32
    %c0_i32_1 = arith.constant 0 : i32
    return %c0_i32, %c0_i32_0 : i32, i32
  }
  func.func @transform_7(%arg0: i32) -> (i32, i32, i32) {
    %c0_i32 = arith.constant 0 : i32
    %c0_i32_0 = arith.constant 0 : i32
    %c0_i32_1 = arith.constant 0 : i32
    return %arg0, %c0_i32, %c0_i32_0 : i32, i32, i32
  }
}

</mosaic_0001>

<bundles_post_ra>
// kernel: tpu_custom_call.1
= control target key start
LH: loop header
LB: loop body
LE: loop exit
PB: predicated region body
PF: predicated region fallthrough
CT: control target
= control target key end

     0   :  { %12 = vsyncpa [#allocation4], 0  ;;  %s1195_s0 = inlined_call_operand.vmem [shape: f32[2,4,256], index: 0, kind: input, shape index: {}]   ;;  %s1196_s1 = inlined_call_operand.vmem [shape: f32[8,36], index: 1, kind: input, shape index: {}]   ;;  %s1197_s2 = inlined_call_operand.hbm [shape: f32[32,256], index: 2, kind: input, shape index: {}]   ;;  %s1198_s3 = inlined_call_operand.vmem [shape: f32[8,4], index: 3, kind: input, shape index: {}]   ;;  %s1199_s4 = inlined_call_operand.vmem [shape: f32[8,1], index: 4, kind: input, shape index: {}]   ;;  %s1200_s5 = inlined_call_operand.hbm [shape: f32[8,8], index: 5, kind: input, shape index: {}]   ;;  %s1201_s6 = inlined_call_operand.vmem [shape: f32[8,1], index: 6, kind: input, shape index: {}]   ;;  %s1202_s7 = inlined_call_operand.hbm [shape: f32[2,8,256], index: 7, kind: output, shape index: {}]  }
   0x1   :  { %13 = vsyncpa [#allocation7], 0 }
   0x2   :  { %14 = vsyncpa [#allocation5], 0 }
   0x3   :  { %16 = vsyncpa [#allocation5 + $0x1], 0  ;;  %s1040_s24 = smov 0   ;;  %s1042_s25 = smov 0  }
   0x4   :  { %s1044_s26 = smov 0   ;;  %s1046_s27 = smov 0  }
   0x5 LB: > { %s1061_s28 = sadd.s32 4294967295, %s984_s27   ;;  %s753_s29 = sadd.s32 4294967294, %s984_s27   ;;  %s984_s27 = sphi %s1046_s27, %s1209_s27   ;;  %s980_s26 = sphi %s1044_s26, %s1208_s26   ;;  %s976_s25 = sphi %s1042_s25, %s1207_s25   ;;  %s972_s24 = sphi %s1040_s24, %s1206_s24  }
   0x6   : > { %s1065_s30 = sadd.s32 1, %s984_s27   ;;  %s181_s8 = sadd.s32 1, %s980_s26 }
   0x7   : > { %s178_s9 = ssub.s32 %s984_s27, %s1065_s30  ;;  %p191_p0 = scmp.ne.s32.totalorder %s980_s26, %s976_s25 }
   0x8   : > { %p179_p1 = scmp.eq.s32.totalorder %s178_s9, 0  ;;  %p192_p2 = scmp.eq.s32.totalorder %s1061_s28, 1 }
   0x9   : > { %p197_p3 = scmp.ne.s32.totalorder %s976_s25, %s972_s24  ;;  %p198_p4 = scmp.eq.s32.totalorder %s753_s29, 1 }
   0xa   : > { %s1076_s10 = scalar_select %p179_p1, %s980_s26, %s181_s8  }
   0xb   : > { %p1078_p5 = por %p192_p2, %p191_p0  ;;  %p1082_p6 = por %p198_p4, %p197_p3 }
   0xc   : > { %p754_p7 = scmp.ge.s32.totalorder %s984_s27, 1  ;;  %p205_p8 = scmp.lt.s32.totalorder %s984_s27, 3 }
   0xd   : > { %p799_p9 = scmp.eq.s32.totalorder %s1061_s28, 0  ;;  %s219_s16 = sshll.u32 %s1197_s2, 4  ;;  %s220_s16 = int_to_ptr.hbm [resolvable:$true] %s219_s16 }
   0xe   : > { %p1089_p10 = pnand %p754_p7, %p205_p8  ;;  %s986_s17 = smov [#allocation3]  }
   0xf   : > { %s221_s18 = sshll.u32 %s986_s17, 4  ;;  %s240_s21 = sshll.u32 %s1200_s5, 4  ;;  %s222_s18 = int_to_ptr.vmem [resolvable:$true] %s221_s18  ;;  %s241_s21 = int_to_ptr.hbm [resolvable:$true] %s240_s21 }
  0x10   : > { %p788_p11 = pneg %p1089_p10  ;;  %s987_s22 = smov 256  }
  0x11   : > { %s988_s23 = smov 16   ;;  %s989_s29 = smov [#allocation6]  }
  0x12   : > { %p789_p12 = pnand %p799_p9, %p788_p11  ;;  %s242_s8 = sshll.u32 %s989_s29, 4  ;;  %s243_s8 = int_to_ptr.vmem [resolvable:$true] %s242_s8 }
  0x13   : > { %266 = sbr.rel (%p1089_p10) target bundleno = 544 (0x220), region = 48 }
  0x14   : > { %791 = dma.hbm_to_vmem [thread:$0]  (!%p789_p12), %s220_s16, 1024, %s222_s18, [#allocation4], %s987_s22, %s987_s22, %s988_s23  }
  0x15   : > { %794 = dma.hbm_to_vmem [thread:$0]  (!%p789_p12), %s241_s21, 128, %s243_s8, [#allocation7]  }
  0x18   : > { %959 = dma.done.wait (%p799_p9), [#allocation4], 1024  }
  0x19   : > { %961 = vsyncadd (%p799_p9), [#allocation4], 4294966272 }
  0x1a   : > { %963 = dma.done.wait (%p799_p9), [#allocation7], 128  }
  0x1b   : > { %965 = vsyncadd (%p799_p9), [#allocation7], 4294967168  ;;  %p304_p13 = scmp.lt.s32.totalorder %s1061_s28, 1  ;;  %vm316_vm0 = vcmask 1043456   ;;  %v990_v10 = vmov 256.0   ;;  %s991_s17 = smov 16   ;;  %v346_v34 = vlaneseq }
  0x1c   : > { %852 = vrcp.f32 %v990_v10  ;;  %s992_s18 = smov 15   ;;  %s993_s19 = smov 1   ;;  %v542_v25 = vld [vmem:[%s1198_s3] sm:$0xff]  ;;  %vm544_vm2 = vcmask 31744   ;;  %v369_v35 = vld [vmem:[#allocation3] sm:$0xf0] }
  0x1d   : > { %s305_s9 = scalar_select %p304_p13, %s1061_s28, 1  ;;  %v370_v36 = vld [vmem:[#allocation3 + $0x8] sm:$0xf0]  ;;  %v1140_v39 = vand.u32 127, %v346_v34  ;;  %v373_v40 = vrot.slane %v369_v35, 4  ;;  %vm574_vm7 = vcmask 64512  }
  0x1e   : > { %s994_s22 = smov 127   ;;  %s995_s23 = smov 113   ;;  %v374_v41 = vrot.slane %v370_v36, 4  ;;  %v417_v43 = vld [vmem:[#allocation3 + $0x10] sm:$0xf0]  ;;  %vm603_vm12 = vcmask 293888  }
  0x1f   : > { %s776_s14 = sshll.u32 %s305_s9, 3  ;;  %s996_s29 = smov 112   ;;  %vm366_vm3 = vcmp.lt.s32.totalorder %v1140_v39, 16  ;;  %v418_v44 = vld [vmem:[#allocation3 + $0x18] sm:$0xf0]  ;;  %vm414_vm4 = vcmp.lt.s32.totalorder %v1140_v39, 1 }
  0x20   : > { %s308_s16 = scalar_lea.vmem %s1195_s0, %s776_s14  ;;  %s997_s8 = smov 111   ;;  %v421_v49 = vrot.slane %v417_v43, 4  ;;  %v422_v50 = vrot.slane %v418_v44, 4  ;;  %vm444_vm5 = vcmp.lt.s32.totalorder %v1140_v39, 127  ;;  %v447_v61 = vld [vmem:[#allocation3 + $0x20] sm:$0xf] }
  0x21   : > { %v1118_v0 = vld [vmem:[%s308_s16] sm:$0xff]  ;;  %s998_s9 = smov 17   ;;  %vm468_vm6 = vcmp.lt.s32.totalorder %v1140_v39, 113  ;;  %vm492_vm8 = vcmp.lt.s32.totalorder %v1140_v39, 112  ;;  %vm516_vm9 = vcmp.lt.s32.totalorder %v1140_v39, 111  ;;  %vm348_vm10 = vcmp.lt.s32.totalorder %v1140_v39, 17 }
  0x22   : > { %311 = vst [vmem:[#allocation1] ss:$2 sm:$0xff] %v1118_v0  ;;  %v853_v11 = vpop.eup %852  ;;  %v448_v62 = vld [vmem:[#allocation3 + $0x28] sm:$0xf]  ;;  %vm396_vm11 = vcmp.lt.s32.totalorder %v1140_v39, 15  ;;  %s777_s21 = sshll.u32 %s1061_s28, 4 }
  0x23   : > { %v323_v14 = vmul.f32 256.0, %v853_v11  ;;  %vm327_vm1 = vweird.f32 %v853_v11 }
  0x25   : > { %v324_v15 = vsub.f32 1.0, %v323_v14 }
  0x27   : > { %v325_v18 = vmul.f32 %v853_v11, %v324_v15 }
  0x29   : > { %v312_v1 = vld.sshfl [vmem:[#allocation1] sm:$0xff pattern:$0x75316420]  ;;  %v313_v2 = vld.sshfl [vmem:[#allocation1 + $0x8] sm:$0xff pattern:$0x75316420]  ;;  %v326_v19 = vadd.f32 %v853_v11, %v325_v18 }
  0x2a   : > { %v317_v3 = vsel %vm316_vm0, %v312_v1, 0.0  ;;  %v318_v4 = vsel %vm316_vm0, %v313_v2, 0.0  ;;  %330 = vst [vmem:[#allocation1] ss:$2 sm:$0xff] %v1118_v0 }
  0x2b   : > { %v319_v5 = vadd.f32 %v318_v4, %v317_v3  ;;  %v328_v22 = vsel %vm327_vm1, %v853_v11, %v326_v19  ;;  %v543_v11 = vld [vmem:[%s1199_s4] sm:$0xff] }
  0x2d   : > { %320 = vadd.xlane.f32.xlu0 %v319_v5  ;;  %v471_v5 = vld [vmem:[#allocation3 + $0x20] sm:$0xf0] }
  0x31   : > { %v331_v6 = vld.sshfl [vmem:[#allocation1] sm:$0xff pattern:$0x75316420]  ;;  %v332_v7 = vld.sshfl [vmem:[#allocation1 + $0x8] sm:$0xff pattern:$0x75316420] }
  0x32   : > { %337 = vst [vmem:[#allocation1] ss:$2 sm:$0xff] %v1118_v0 }
  0x33   : > { %335 = vst [vmem:[#allocation2 + $0x30] sm:$0xf] %v331_v6  ;;  %v472_v6 = vld [vmem:[#allocation3 + $0x28] sm:$0xf0] }
  0x34   : > { %336 = vst [vmem:[#allocation2 + $0x20] sm:$0xf] %v332_v7  ;;  %v476_v10 = vrot.slane %v472_v6, 4 }
  0x39   : > { %v338_v8 = vld.sshfl [vmem:[#allocation1] sm:$0xff pattern:$0x75316420]  ;;  %v339_v9 = vld.sshfl [vmem:[#allocation1 + $0x8] sm:$0xff pattern:$0x75316420] }
  0x3a   : > { %357 = vst [vmem:[#allocation1] ss:$2 sm:$0xff] %v1118_v0 }
  0x41   : > { %v358_v12 = vld.sshfl [vmem:[#allocation1] sm:$0xff pattern:$0x75316420]  ;;  %v359_v13 = vld.sshfl [vmem:[#allocation1 + $0x8] sm:$0xff pattern:$0x75316420] }
  0x42   : > { %362 = vrot.lane.b32.xlu1 %v358_v12, %s991_s17  ;;  %387 = vst [vmem:[#allocation1] ss:$2 sm:$0xff] %v1118_v0  ;;  %364 = vrot.lane.b32.xlu2 %v359_v13, %s991_s17 }
  0x49   : > { %v388_v16 = vld.sshfl [vmem:[#allocation1] sm:$0xff pattern:$0x75316420]  ;;  %v389_v17 = vld.sshfl [vmem:[#allocation1 + $0x8] sm:$0xff pattern:$0x75316420] }
  0x4a   : > { %405 = vst [vmem:[#allocation1] ss:$2 sm:$0xff] %v1118_v0  ;;  %392 = vrot.lane.b32.xlu0 %v388_v16, %s992_s18 }
  0x51   : > { %v406_v20 = vld.sshfl [vmem:[#allocation1] sm:$0xff pattern:$0x75316420]  ;;  %v407_v21 = vld.sshfl [vmem:[#allocation1 + $0x8] sm:$0xff pattern:$0x75316420] }
  0x52   : > { %435 = vst [vmem:[#allocation1] ss:$2 sm:$0xff] %v1118_v0  ;;  %412 = vrot.lane.b32.xlu0 %v407_v21, %s993_s19  ;;  %410 = vrot.lane.b32.xlu2 %v406_v20, %s993_s19  ;;  %v572_v21 = vld [vmem:[#allocation6] sm:$0xff]  ;;  %s301_s19 = sand.u32 1, %s976_s25  }
  0x53   : > { %s761_s20 = sshll.u32 %s301_s19, 4  ;;  %s656_s15 = scalar_lea.sflag [#allocation5], %s301_s19 }
  0x59   : > { %v436_v26 = vld.sshfl [vmem:[#allocation1] sm:$0xff pattern:$0x75316420]  ;;  %v437_v27 = vld.sshfl [vmem:[#allocation1 + $0x8] sm:$0xff pattern:$0x75316420] }
  0x5a   : > { %442 = vrot.lane.b32.xlu1 %v437_v27, %s994_s22  ;;  %459 = vst [vmem:[#allocation1] ss:$2 sm:$0xff] %v1118_v0  ;;  %440 = vrot.lane.b32.xlu2 %v436_v26, %s994_s22 }
  0x61   : > { %v460_v28 = vld.sshfl [vmem:[#allocation1] sm:$0xff pattern:$0x75316420]  ;;  %v461_v29 = vld.sshfl [vmem:[#allocation1 + $0x8] sm:$0xff pattern:$0x75316420] }
  0x62   : > { %466 = vrot.lane.b32.xlu1 %v461_v29, %s995_s23  ;;  %483 = vst [vmem:[#allocation1] ss:$2 sm:$0xff] %v1118_v0  ;;  %464 = vrot.lane.b32.xlu2 %v460_v28, %s995_s23  ;;  %v519_v29 = vld [vmem:[#allocation3 + $0x30] sm:$0xf0] }
  0x63   : > { %v523_v35 = vrot.slane %v519_v29, 4 }
  0x69   : > { %v484_v30 = vld.sshfl [vmem:[#allocation1] sm:$0xff pattern:$0x75316420]  ;;  %v485_v31 = vld.sshfl [vmem:[#allocation1 + $0x8] sm:$0xff pattern:$0x75316420] }
  0x6a   : > { %490 = vrot.lane.b32.xlu1 %v485_v31, %s996_s29  ;;  %507 = vst [vmem:[#allocation1] ss:$2 sm:$0xff] %v1118_v0  ;;  %488 = vrot.lane.b32.xlu0 %v484_v30, %s996_s29  ;;  %v520_v30 = vld [vmem:[#allocation3 + $0x38] sm:$0xf0]  ;;  %s667_s29 = scalar_lea.hbm %s1202_s7, %s777_s21 }
  0x6b   : > { %v524_v36 = vrot.slane %v520_v30, 4  ;;  %s671_s14 = sshll.u32 %s667_s29, 4  ;;  %s672_s14 = int_to_ptr.hbm [resolvable:$true] %s671_s14 }
  0x6c   : > { %s928_s13 = sshra.s32 %s672_s14, 4  ;;  %s929_s13 = int_to_ptr.hbm [resolvable:$true] %s928_s13 }
  0x6d   : > { %s930_s28 = scalar_lea.hbm %s929_s13, 16  ;;  %p935_p3 = scmp.lt.s32.totalorder %s929_s13, %s1202_s7 }
  0x6e   : > { %p931_p0 = scmp.ne.s32.totalorder %s929_s13, %s930_s28 }
  0x70   : > { %p932_p1 = pnand %p931_p0, %p1078_p5 }
  0x71   : > { %v508_v32 = vld.sshfl [vmem:[#allocation1] sm:$0xff pattern:$0x75316420]  ;;  %v509_v33 = vld.sshfl [vmem:[#allocation1 + $0x8] sm:$0xff pattern:$0x75316420] }
  0x72   : > { %512 = vrot.lane.b32.xlu1 %v508_v32, %s997_s8  ;;  %344 = vrot.lane.b32.xlu0 %v339_v9, %s998_s9  ;;  %v475_v9 = vrot.slane %v471_v5, 4  ;;  %v573_v5 = vld [vmem:[%s1201_s6] sm:$0xff]  ;;  %p933_p2 = pneg %p932_p1 }
  0x73   : > { %514 = vrot.lane.b32.xlu2 %v509_v33, %s997_s8  ;;  %s303_s8 = scalar_lea.vmem [#allocation8], %s761_s20 }
  0x7a   : > { %394 = vrot.lane.b32.xlu1 %v389_v17, %s992_s18  ;;  %s934_s18 = scalar_lea.hbm %s1202_s7, 32 }
  0x7b   : > { %342 = vrot.lane.b32.xlu2 %v338_v8, %s998_s9  ;;  %s669_s9 = sshll.u32 %s303_s8, 4  ;;  %p936_p4 = scmp.lt.s32.totalorder %s934_s18, %s930_s28  ;;  %s670_s9 = int_to_ptr.vmem [resolvable:$true] %s669_s9 }
  0x7d   : > { %p937_p7 = por %p936_p4, %p935_p3 }
  0x7f   : > { %p938_p8 = pnand %p937_p7, %p933_p2 }
  0x9c   : > { %v365_v37 = vpop.permute.xlu2 %364 }
  0xa0   : > { %v321_v23 = vpop.xlane.xlu0 %320 }
  0xa1   : > { %v329_v24 = vmul.f32 %v328_v22, %v321_v23 }
  0xa3   : > { %764 = vmatpush.msk.msra.mxu0 %vm316_vm0, %v329_v24  ;;  %v495_v24 = vld [vmem:[#allocation3 + $0x30] sm:$0xf] }
  0xa4   : > { %765 = vmatmul.msk.f32.vlgmr.msra.gmra.mxu0 %vm544_vm2, %v542_v25  ;;  %v496_v25 = vld [vmem:[#allocation3 + $0x38] sm:$0xf] }
  0xac   : > { %v411_v53 = vpop.permute.xlu2 %410 }
  0xb4   : > { %v363_v42 = vpop.permute.xlu1 %362  ;;  %v441_v0 = vpop.permute.xlu2 %440 }
  0xb5   : > { %v367_v45 = vsel %vm366_vm3, %v363_v42, %v365_v37  ;;  %v368_v46 = vsel %vm366_vm3, %v365_v37, %v363_v42  ;;  %v352_v42 = vld [vmem:[#allocation3 + $0x8] sm:$0xf] }
  0xb6   : > { %v377_v47 = vmul.f32 %v373_v40, %v368_v46  ;;  %v378_v48 = vmul.f32 %v374_v41, %v367_v45  ;;  %v351_v41 = vld [vmem:[#allocation3] sm:$0xf] }
  0xb8   : > { %v381_v51 = vrot.slane %v377_v47, 4  ;;  %v382_v52 = vrot.slane %v378_v48, 4 }
  0xba   : > { %385 = vst [vmem:[#allocation2 + $0x8] sm:$0xf0] %v381_v51 }
  0xbb   : > { %386 = vst [vmem:[#allocation2] sm:$0xf0] %v382_v52  ;;  %v399_v52 = vld [vmem:[#allocation3 + $0x10] sm:$0xf] }
  0xbc   : > { %v1138_v38 = vpop.permute.xlu0 %392  ;;  %v465_v13 = vpop.permute.xlu2 %464 }
  0xc4   : > { %v413_v54 = vpop.permute.xlu0 %412 }
  0xc5   : > { %v415_v55 = vsel %vm414_vm4, %v411_v53, %v413_v54  ;;  %v416_v56 = vsel %vm414_vm4, %v413_v54, %v411_v53  ;;  %v400_v53 = vld [vmem:[#allocation3 + $0x18] sm:$0xf] }
  0xc6   : > { %v425_v57 = vmul.f32 %v421_v49, %v416_v56  ;;  %v426_v58 = vmul.f32 %v422_v50, %v415_v55 }
  0xc8   : > { %v429_v59 = vrot.slane %v425_v57, 4  ;;  %v430_v60 = vrot.slane %v426_v58, 4 }
  0xca   : > { %433 = vst [vmem:[#allocation2 + $0x48] sm:$0xf0] %v429_v59 }
  0xcb   : > { %434 = vst [vmem:[#allocation2 + $0x18] sm:$0xf0] %v430_v60 }
  0xcc   : > { %v443_v63 = vpop.permute.xlu1 %442 }
  0xcd   : > { %v445_v1 = vsel %vm444_vm5, %v441_v0, %v443_v63  ;;  %v446_v2 = vsel %vm444_vm5, %v443_v63, %v441_v0  ;;  %v515_v23 = vpop.permute.xlu2 %514 }
  0xce   : > { %v449_v3 = vmul.f32 %v447_v61, %v445_v1  ;;  %v450_v4 = vmul.f32 %v448_v62, %v446_v2 }
  0xd0   : > { %v453_v7 = vrot.slane %v449_v3, 4  ;;  %v454_v8 = vrot.slane %v450_v4, 4  ;;  %v531_v3 = vld [vmem:[%s1196_s1] sm:$0xff]  ;;  %v999_v4 = vmov 0  }
  0xd1   : > { %850 = vset.pattern.permute.xlu1 %v999_v4  ;;  %851 = vset.pattern.permute.xlu0 %v999_v4 }
  0xd2   : > { %457 = vst [vmem:[#allocation2 + $0x30] sm:$0xf0] %v453_v7 }
  0xd3   : > { %458 = vst [vmem:[#allocation2 + $0x20] sm:$0xf0] %v454_v8 }
  0xd4   : > { %v467_v12 = vpop.permute.xlu1 %466 }
  0xd5   : > { %v469_v14 = vsel %vm468_vm6, %v465_v13, %v467_v12  ;;  %v470_v15 = vsel %vm468_vm6, %v467_v12, %v465_v13  ;;  %v343_v40 = vpop.permute.xlu2 %342 }
  0xd6   : > { %v479_v17 = vmul.f32 %v475_v9, %v469_v14  ;;  %v480_v18 = vmul.f32 %v476_v10, %v470_v15 }
  0xd8   : > { %481 = vst [vmem:[#allocation2 + $0x28] sm:$0xf] %v479_v17 }
  0xd9   : > { %482 = vst [vmem:[#allocation2 + $0x10] sm:$0xf] %v480_v18  ;;  %v536_v39 = vld [vmem:[#allocation2 + $0x30] sm:$0xff] }
  0xda   : > { %v537_v63 = vld [vmem:[#allocation2 + $0x20] sm:$0xff] }
  0xdc   : > { %v491_v22 = vpop.permute.xlu1 %490  ;;  %v489_v26 = vpop.permute.xlu0 %488 }
  0xdd   : > { %v493_v27 = vsel %vm492_vm8, %v489_v26, %v491_v22  ;;  %v494_v28 = vsel %vm492_vm8, %v491_v22, %v489_v26 }
  0xde   : > { %v497_v31 = vmul.f32 %v495_v24, %v493_v27  ;;  %v498_v32 = vmul.f32 %v496_v25, %v494_v28 }
  0xe0   : > { %v501_v33 = vrot.slane %v497_v31, 4  ;;  %v502_v34 = vrot.slane %v498_v32, 4 }
  0xe2   : > { %505 = vst [vmem:[#allocation2 + $0x28] sm:$0xf0] %v501_v33 }
  0xe3   : > { %506 = vst [vmem:[#allocation2 + $0x10] sm:$0xf0] %v502_v34 }
  0xe4   : > { %v513_v37 = vpop.permute.xlu1 %512  ;;  %v345_v45 = vpop.permute.xlu0 %344 }
  0xe5   : > { %v517_v43 = vsel %vm516_vm9, %v513_v37, %v515_v23  ;;  %v518_v44 = vsel %vm516_vm9, %v515_v23, %v513_v37  ;;  %v349_v48 = vsel %vm348_vm10, %v343_v40, %v345_v45  ;;  %v350_v49 = vsel %vm348_vm10, %v345_v45, %v343_v40 }
  0xe6   : > { %v527_v46 = vmul.f32 %v523_v35, %v517_v43  ;;  %v528_v47 = vmul.f32 %v524_v36, %v518_v44  ;;  %v353_v50 = vmul.f32 %v351_v41, %v350_v49  ;;  %v354_v51 = vmul.f32 %v352_v42, %v349_v48 }
  0xe8   : > { %529 = vst [vmem:[#allocation2 + $0x40] sm:$0xf] %v527_v46 }
  0xe9   : > { %530 = vst [vmem:[#allocation2 + $0x38] sm:$0xf] %v528_v47  ;;  %v538_v60 = vld [vmem:[#allocation2 + $0x28] sm:$0xff] }
  0xea   : > { %355 = vst [vmem:[#allocation2 + $0x8] sm:$0xf] %v353_v50  ;;  %v539_v62 = vld [vmem:[#allocation2 + $0x10] sm:$0xff] }
  0xeb   : > { %356 = vst [vmem:[#allocation2] sm:$0xf] %v354_v51 }
  0xec   : > { %v395_v54 = vpop.permute.xlu1 %394 }
  0xed   : > { %v397_v55 = vsel %vm396_vm11, %v1138_v38, %v395_v54  ;;  %v398_v56 = vsel %vm396_vm11, %v395_v54, %v1138_v38 }
  0xee   : > { %v401_v57 = vmul.f32 %v399_v52, %v398_v56  ;;  %v402_v58 = vmul.f32 %v400_v53, %v397_v55 }
  0xef   : > { %v540_v59 = vld [vmem:[#allocation2 + $0x40] sm:$0xf] }
  0xf0   : > { %403 = vst [vmem:[#allocation2 + $0x48] sm:$0xf] %v401_v57  ;;  %767 = vmatpush.msk.msra.mxu2 %vm316_vm0, %v540_v59  ;;  %v541_v61 = vld [vmem:[#allocation2 + $0x38] sm:$0xf] }
  0xf1   : > { %404 = vst [vmem:[#allocation2 + $0x18] sm:$0xf] %v402_v58  ;;  %769 = vmatpush.msk.msra.mxu3 %vm316_vm0, %v541_v61  ;;  %v532_v38 = vld [vmem:[#allocation2 + $0x8] sm:$0xff] }
  0xf2   : > { %625 = vmatpush.msra.mxu2 %v538_v60  ;;  %v533_v2 = vld [vmem:[#allocation2] sm:$0xff] }
  0xf3   : > { %645 = vmatpush.msra.mxu3 %v539_v62 }
  0xf4   : > { %626 = vmatpush.msra.mxu2 %v536_v39 }
  0xf5   : > { %646 = vmatpush.msra.mxu3 %v537_v63 }
  0xf7   : > { %v534_v0 = vld [vmem:[#allocation2 + $0x48] sm:$0xff] }
  0xf8   : > { %627 = vmatpush.msra.mxu2 %v534_v0  ;;  %v535_v1 = vld [vmem:[#allocation2 + $0x18] sm:$0xff] }
  0xf9   : > { %647 = vmatpush.msra.mxu3 %v535_v1 }
  0xfa   : > { %628 = vmatpush.msra.mxu2 %v532_v38 }
  0xfb   : > { %648 = vmatpush.msra.mxu3 %v533_v2  ;;  %768 = vmatmul.msk.f32.vlgmr.msra.gmra.mxu2 %vm603_vm12, %v531_v3 }
  0xfc   : > { %770 = vmatmul.msk.f32.vlgmr.msra.gmra.mxu3 %vm603_vm12, %v531_v3 }
 0x121   : > { %v568_v16 = vpop.f32.mrf.mxu0 }
 0x122   : > { %v569_v19 = vadd.f32 %v568_v16, %v543_v11 }
 0x124   : > { %v571_v20 = vmax.f32 %v569_v19, 0.0 }
 0x126   : > { %593 = vmatpush.msra.mxu1 %v571_v20 }
 0x127   : > { %766 = vmatmul.msk.f32.vlgmr.msra.gmra.mxu1 %vm574_vm7, %v572_v21 }
 0x17e   : > { %v630_v8 = vpop.f32.mrf.mxu2 }
 0x17f   : > { %v650_v9 = vpop.f32.mrf.mxu3 }
 0x1a4   : > { %v595_v6 = vpop.f32.mrf.mxu1 }
 0x1a5   : > { %v596_v7 = vadd.f32 %v595_v6, %v573_v5 }
 0x1a7   : > { %600 = vperm.xlu1 %850, %v596_v7  }
 0x219   : > { %v601_v10 = vpop.permute.xlu1 %600 }
 0x21a   : > { %v631_v11 = vadd.f32 %v630_v8, %v601_v10  ;;  %v651_v12 = vadd.f32 %v650_v9, %v601_v10 }
 0x21c   : > { %653 = vst [vmem:[%s303_s8] sm:$0xff] %v631_v11 }
 0x21d   : > { %654 = vst [vmem:[%s303_s8 + $0x8] sm:$0xff] %v651_v12 }
 0x21e   : > { %941 = shalt.err (!%p938_p8)
}
 0x21f   : > { %786 = dma.vmem_to_hbm [thread:$0]  (%p1078_p5), %s670_s9, 256, %s672_s14, %s656_s15  }
 0x220 PF: > { %p803_p9 = scmp.ge.s32.totalorder %s984_s27, 2  ;;  %s683_s19 = sand.u32 1, %s972_s24  }
 0x221   : > { %s684_s22 = scalar_lea.sflag [#allocation5], %s683_s19 }
 0x222   : > { %p796_p10 = pnand %p803_p9, %p1082_p6 }
 0x224   : > { %p797_p11 = pneg %p796_p10 }
 0x226   : > { %967 = dma.done.wait (%p797_p11), %s684_s22, 256  }
 0x227   : > { %969 = vsyncadd (%p797_p11), %s684_s22, 4294967040  ;;  %p19_p12 = scmp.ge.s32.totalorder %s1065_s30, 4   ;;  %s1206_s24 = smov %s976_s25 }
 0x228   : > { %s1207_s25 = smov %s980_s26  ;;  %s1208_s26 = smov %s1076_s10 }
 0x229   : > { %s1209_s27 = smov %s1065_s30  ;;  %21 = sbr.rel (!%p19_p12) target bundleno = 5 (0x5), region = 92 }
 0x22e   :  { %690 = vsyncpa [#allocation4], 1 }
 0x22f   :  { %692 = vsyncpa [#allocation4 + $0x1], 1 }
 0x230   :  { %693 = vsyncpa [#allocation7], 1 }
 0x231   :  { %694 = vsyncpa [#allocation5], 1 }
 0x232   :  { %696 = vsyncpa [#allocation5 + $0x1], 1 }

</bundles_post_ra>
